<compile_context>
chip_gen: v7x
topology: tpu7x:2x2x1
jax: 0.10.0
libtpu: 0.0.40
codegen_flags: <defaults>
</compile_context>

<pallas_src>
import functools

import jax
import jax.numpy as jnp
from jax.experimental import pallas as pl
from jax.experimental.pallas import tpu as pltpu


def _round_up(x, m):
    return -(-x // m) * m


def _sublane_mult(itemsize):
    # f32 -> 8, bf16 -> 16, int8/bool -> 32 sublanes per VMEM tile.
    return 8 * max(1, 4 // int(itemsize))


@functools.lru_cache(maxsize=None)
def _vmem_budget_and_limit():
    """Per-generation VMEM budget (for tile sizing) and scoped-VMEM limit."""
    cap = None
    try:
        cap = getattr(pltpu.get_tpu_info(), "vmem_capacity_bytes", None)
    except Exception:
        cap = None
    if not cap:
        cap = 64 * 1024 * 1024          # assume the smallest (v7x per-TC VMEM)
    budget = min(cap // 4, 24 * 1024 * 1024)
    limit = min(cap // 2, 48 * 1024 * 1024)
    return int(budget), int(limit)


def _choose_tile_w(hw, bytes_per_lane, budget, max_tile_w=None):
    """Spatial tile width (lane dim): multiple of 128, or == hw if it fits."""
    tile_w = budget // max(bytes_per_lane, 1)
    if max_tile_w is not None:
        tile_w = min(tile_w, max_tile_w)
    tile_w = max((tile_w // 128) * 128, 128)
    return hw if hw <= tile_w else int(tile_w)


def _make_kernel(hw, tile_w, tiles_per_split, has_mask, needs_tail):
    """Focal-loss accumulation kernel, specialized on static config."""

    def kernel(*refs):
        if has_mask:
            pred_ref, gt_ref, mask_ref, out_ref, tot_acc, np_acc = refs
        else:
            pred_ref, gt_ref, out_ref, tot_acc, np_acc = refs

        split = pl.program_id(0)
        s = pl.program_id(1)
        last = pl.num_programs(1) - 1

        @pl.when(s == 0)
        def _init():
            tot_acc[...] = jnp.zeros_like(tot_acc)
            np_acc[...] = jnp.zeros_like(np_acc)

        pred = pred_ref[...].astype(jnp.float32)
        gt = gt_ref[...].astype(jnp.float32)

        is_pos = gt == 1.0
        one_m_pred = 1.0 - pred
        one_m_gt = 1.0 - gt

        # Single EUP log: log(pred) on positives, log(1 - pred) elsewhere.
        lx = jnp.log(jnp.where(is_pos, pred, one_m_pred))

        pos_term = lx * (one_m_pred * one_m_pred)
        gt2 = one_m_gt * one_m_gt
        neg_term = lx * (pred * pred) * (gt2 * gt2)
        # gt > 1 contributes to neither branch in the reference.
        neg_term = jnp.where(gt < 1.0, neg_term, 0.0)
        combined = jnp.where(is_pos, pos_term, neg_term)

        if has_mask:
            # Broadcast the (B, TW) mask over C once; reuse for both terms.
            m = jnp.broadcast_to(
                mask_ref[...].astype(jnp.float32)[:, None, :], pred.shape)
            combined = combined * m
            npos = jnp.where(is_pos, m, 0.0)
        else:
            npos = jnp.where(is_pos, 1.0, 0.0)

        if needs_tail:
            start = (split * tiles_per_split + s) * tile_w
            rem = hw - start          # may be < tile_w (tail) or <= 0 (overflow)

            @pl.when(rem >= tile_w)
            def _accum_full():
                tot_acc[...] += combined
                np_acc[...] += npos

            @pl.when(rem < tile_w)
            def _accum_tail():
                col = jax.lax.broadcasted_iota(
                    jnp.int32, combined.shape, combined.ndim - 1)
                valid = col < rem
                # Select (not multiply): garbage/NaN in invalid lanes is dropped.
                tot_acc[...] += jnp.where(valid, combined, 0.0)
                np_acc[...] += jnp.where(valid, npos, 0.0)
        else:
            tot_acc[...] += combined
            np_acc[...] += npos

        @pl.when(s == last)
        def _finalize():
            total = jnp.sum(tot_acc[...])
            num_pos = jnp.sum(np_acc[...])
            lane = jax.lax.broadcasted_iota(jnp.int32, out_ref.shape, 2)
            out_ref[...] = jnp.where(lane == 0, total,
                                     jnp.where(lane == 1, num_pos, 0.0))

    return kernel


@functools.partial(jax.jit, static_argnames=("has_mask", "max_tile_w"))
def _focal_loss_impl(pred, gt, mask, has_mask, max_tile_w=None):
    b, c, h, w = pred.shape
    hw = h * w
    budget, vmem_limit = _vmem_budget_and_limit()

    in_itemsize = max(jnp.dtype(pred.dtype).itemsize, jnp.dtype(gt.dtype).itemsize)
    sub_in = _sublane_mult(in_itemsize)

    if has_mask:
        # (B, C, TW) blocks; (B, TW) mask streamed and broadcast in-kernel.
        pred_in = pred.reshape(b, c, hw)
        gt_in = gt.reshape(b, c, hw)
        m = mask
        if m.dtype == jnp.bool_:
            m = m.astype(jnp.uint8)
        mask_in = m.reshape(b, hw)
        mask_itemsize = jnp.dtype(mask_in.dtype).itemsize
        bytes_per_lane = (
            2 * 2 * b * _round_up(c, sub_in) * in_itemsize        # pred+gt, dbl buf
            + 2 * b * _round_up(c, 8) * 4                         # 2 f32 accumulators
            + 2 * _round_up(b, _sublane_mult(mask_itemsize)) * mask_itemsize)
        data_block = (b, c, tile_w_placeholder) if False else None  # set below
    else:
        # Flatten (B, C) into the sublane dim for full vreg occupancy.
        r = b * c
        pred_in = pred.reshape(r, hw)
        gt_in = gt.reshape(r, hw)
        bytes_per_lane = (2 * 2 * _round_up(r, sub_in) * in_itemsize
                          + 2 * _round_up(r, 8) * 4)

    tile_w = _choose_tile_w(hw, bytes_per_lane, budget, max_tile_w)
    n_tiles = -(-hw // tile_w)
    n_splits = 2 if n_tiles >= 2 else 1        # megacore sharding on v7x
    tps = -(-n_tiles // n_splits)
    padded = (n_splits * tps != n_tiles)
    needs_tail = (hw % tile_w != 0) or padded

    if padded:
        def spatial_idx(sp, s):
            # Clamp so the DMA never reads past the array; the clamped tiles
            # are fully masked out in-kernel via `rem <= 0`.
            return jnp.minimum(sp * tps + s, n_tiles - 1)
    else:
        def spatial_idx(sp, s):
            return sp * tps + s

    if has_mask:
        data_block = (b, c, tile_w)
        data_spec = pl.BlockSpec(data_block,
                                 lambda sp, s: (0, 0, spatial_idx(sp, s)))
        in_specs = [data_spec, data_spec,
                    pl.BlockSpec((b, tile_w),
                                 lambda sp, s: (0, spatial_idx(sp, s)))]
        inputs = (pred_in, gt_in, mask_in)
    else:
        data_block = (b * c, tile_w)
        data_spec = pl.BlockSpec(data_block,
                                 lambda sp, s: (0, spatial_idx(sp, s)))
        in_specs = [data_spec, data_spec]
        inputs = (pred_in, gt_in)

    kernel = _make_kernel(hw, tile_w, tps, has_mask, needs_tail)

    partials = pl.pallas_call(
        kernel,
        out_shape=jax.ShapeDtypeStruct((n_splits, 8, 128), jnp.float32),
        grid_spec=pltpu.PrefetchScalarGridSpec(
            num_scalar_prefetch=0,
            grid=(n_splits, tps),
            in_specs=in_specs,
            out_specs=pl.BlockSpec((1, 8, 128), lambda sp, s: (sp, 0, 0)),
            scratch_shapes=[pltpu.VMEM(data_block, jnp.float32)] * 2,
        ),
        compiler_params=pltpu.CompilerParams(
            dimension_semantics=("parallel", "arbitrary"),
            vmem_limit_bytes=vmem_limit,
        ),
    )(*inputs)

    total = partials[:, 0, 0].sum()        # pos_loss + neg_loss
    num_pos = partials[:, 0, 1].sum()

    # loss = -neg_loss                     if num_pos == 0 (pos term is then 0)
    #      = -(pos_loss + neg_loss)/num_pos  otherwise
    denom = jnp.where(num_pos == 0.0, 1.0, num_pos)
    return -total / denom


def focal_loss_centernet(pred, gt, mask=None, *, max_tile_w=None):
    """Pallas equivalent of FocalLossCenterNet.forward(out, target, mask)."""
    if mask is None:
        return _focal_loss_impl(pred, gt, None, has_mask=False,
                                max_tile_w=max_tile_w)
    return _focal_loss_impl(pred, gt, mask, has_mask=True,
                            max_tile_w=max_tile_w)


def _reference(pred, gt, mask=None):
    """Pure-JAX reference mirroring the PyTorch code."""
    pred = pred.astype(jnp.float32)
    gt = gt.astype(jnp.float32)
    pos_inds = (gt == 1.0).astype(jnp.float32)
    neg_inds = (gt < 1.0).astype(jnp.float32)
    neg_weights = (1.0 - gt) ** 4
    pos_loss = jnp.log(pred) * (1.0 - pred) ** 2 * pos_inds
    neg_loss = jnp.log(1.0 - pred) * pred ** 2 * neg_weights * neg_inds
    if mask is not None:
        m = mask.astype(jnp.float32)[:, None, :, :]
        pos_loss = pos_loss * m
        neg_loss = neg_loss * m
        num_pos = (pos_inds * m).sum()
    else:
        num_pos = pos_inds.sum()
    pos_loss = pos_loss.sum()
    neg_loss = neg_loss.sum()
    denom = jnp.where(num_pos == 0.0, 1.0, num_pos)
    return jnp.where(num_pos == 0.0, -neg_loss, -(pos_loss + neg_loss) / denom)


def _make_inputs(key, b, c, h, w):
    k1, k2, k3, k4 = jax.random.split(key, 4)
    pred = jax.nn.sigmoid(jax.random.normal(k1, (b, c, h, w), dtype=jnp.float32))
    pred = jnp.clip(pred, 1e-4, 1.0 - 1e-4)
    gt = jax.random.uniform(k2, (b, c, h, w), dtype=jnp.float32) * 0.9
    peak = jax.random.uniform(k3, (b, c, h, w)) > 0.98
    gt = jnp.where(peak, 1.0, gt)
    mask = (jax.random.uniform(k4, (b, h, w)) > 0.2).astype(jnp.float32)
    return pred, gt, mask


if __name__ == "__main__":
    key = jax.random.PRNGKey(0)
    k_small, k_big = jax.random.split(key, 2)

    # --- small case (single tile), with and without mask ---
    B, C, H, W = 2, 4, 16, 16
    pred, gt, mask = _make_inputs(k_small, B, C, H, W)

    loss = jax.block_until_ready(focal_loss_centernet(pred, gt, mask))
    ref = _reference(pred, gt, mask)
    assert jnp.allclose(loss, ref, rtol=1e-5, atol=1e-5), (loss, ref)

    loss2 = jax.block_until_ready(focal_loss_centernet(pred, gt))
    ref2 = _reference(pred, gt)
    assert jnp.allclose(loss2, ref2, rtol=1e-5, atol=1e-5), (loss2, ref2)

    # --- larger case: multi-tile + 2-way split + clamped/masked tail tile ---
    B2, C2, H2, W2 = 2, 4, 160, 150
    pred_b, gt_b, mask_b = _make_inputs(k_big, B2, C2, H2, W2)
    ref3 = _reference(pred_b, gt_b, mask_b)
    ref4 = _reference(pred_b, gt_b)

    loss3 = jax.block_until_ready(
        focal_loss_centernet(pred_b, gt_b, mask_b, max_tile_w=512))
    assert jnp.allclose(loss3, ref3, rtol=1e-4, atol=1e-5), (loss3, ref3)

    loss4 = jax.block_until_ready(
        focal_loss_centernet(pred_b, gt_b, max_tile_w=512))
    assert jnp.allclose(loss4, ref4, rtol=1e-4, atol=1e-5), (loss4, ref4)

    # default (budget-sized) tiles on the big case as well
    loss5 = jax.block_until_ready(focal_loss_centernet(pred_b, gt_b, mask_b))
    assert jnp.allclose(loss5, ref3, rtol=1e-4, atol=1e-5), (loss5, ref3)

    print("KERNEL_OK")
</pallas_src>

<mosaic_0001>
module attributes {stable_mosaic.version = 11 : i64} {
  func.func @kernel(%arg0: i32, %arg1: i32, %arg2: memref<2x4x256xf32, #tpu.memory_space<vmem>>, %arg3: memref<2x4x256xf32, #tpu.memory_space<vmem>>, %arg4: memref<2x256xf32, #tpu.memory_space<vmem>>, %arg5: memref<1x8x128xf32, #tpu.memory_space<vmem>>, %arg6: memref<2x4x256xf32, #tpu.memory_space<vmem>>, %arg7: memref<2x4x256xf32, #tpu.memory_space<vmem>>) attributes {dimension_semantics = [#tpu.dimension_semantics<parallel>, #tpu.dimension_semantics<arbitrary>], iteration_bounds = array<i64: 1, 1>, scalar_prefetch = 0 : i64, scratch_operands = 2 : i64, tpu.core_type = #tpu.core_type<tc>, window_params = [{transform_indices = @transform_0, window_bounds = array<i64: 2, 4, 256>}, {transform_indices = @transform_1, window_bounds = array<i64: 2, 4, 256>}, {transform_indices = @transform_2, window_bounds = array<i64: 2, 256>}, {transform_indices = @transform_3, window_bounds = array<i64: 1, 8, 128>}]} {
    %c0_i32 = arith.constant 0 : i32
    %0 = arith.cmpi eq, %arg1, %c0_i32 : i32
    %1 = arith.extui %0 : i1 to i32
    %c0_i32_0 = arith.constant 0 : i32
    %2 = arith.cmpi ne, %1, %c0_i32_0 : i32
    scf.if %2 {
      %cst_27 = arith.constant 0.000000e+00 : f32
      %41 = vector.broadcast %cst_27 : f32 to vector<2x4x256xf32>
      %c0_28 = arith.constant 0 : index
      %c0_29 = arith.constant 0 : index
      %c0_30 = arith.constant 0 : index
      %42 = vector.load %arg6[%c0_28, %c0_29, %c0_30] : memref<2x4x256xf32, #tpu.memory_space<vmem>>, vector<2x4x256xf32>
      tpu.vector_store %arg6[%c0_28, %c0_29, %c0_30], %41 {strides = array<i32>} : memref<2x4x256xf32, #tpu.memory_space<vmem>>, vector<2x4x256xf32>,
      %cst_31 = arith.constant 0.000000e+00 : f32
      %43 = vector.broadcast %cst_31 : f32 to vector<2x4x256xf32>
      %c0_32 = arith.constant 0 : index
      %c0_33 = arith.constant 0 : index
      %c0_34 = arith.constant 0 : index
      %44 = vector.load %arg7[%c0_32, %c0_33, %c0_34] : memref<2x4x256xf32, #tpu.memory_space<vmem>>, vector<2x4x256xf32>
      tpu.vector_store %arg7[%c0_32, %c0_33, %c0_34], %43 {strides = array<i32>} : memref<2x4x256xf32, #tpu.memory_space<vmem>>, vector<2x4x256xf32>,
    } else {
    }
    %c0 = arith.constant 0 : index
    %c0_1 = arith.constant 0 : index
    %c0_2 = arith.constant 0 : index
    %3 = vector.load %arg2[%c0, %c0_1, %c0_2] : memref<2x4x256xf32, #tpu.memory_space<vmem>>, vector<2x4x256xf32>
    %c0_3 = arith.constant 0 : index
    %c0_4 = arith.constant 0 : index
    %c0_5 = arith.constant 0 : index
    %4 = vector.load %arg3[%c0_3, %c0_4, %c0_5] : memref<2x4x256xf32, #tpu.memory_space<vmem>>, vector<2x4x256xf32>
    %cst = arith.constant 1.000000e+00 : f32
    %5 = vector.broadcast %cst : f32 to vector<2x4x256xf32>
    %6 = arith.cmpf oeq, %4, %5 : vector<2x4x256xf32>
    %cst_6 = arith.constant 1.000000e+00 : f32
    %7 = vector.broadcast %cst_6 : f32 to vector<2x4x256xf32>
    %8 = arith.subf %7, %3 : vector<2x4x256xf32>
    %cst_7 = arith.constant 1.000000e+00 : f32
    %9 = vector.broadcast %cst_7 : f32 to vector<2x4x256xf32>
    %10 = arith.subf %9, %4 : vector<2x4x256xf32>
    %11 = arith.select %6, %3, %8 : vector<2x4x256xi1>, vector<2x4x256xf32>
    %12 = math.log %11 : vector<2x4x256xf32>
    %13 = arith.mulf %8, %8 : vector<2x4x256xf32>
    %14 = arith.mulf %12, %13 : vector<2x4x256xf32>
    %15 = arith.mulf %10, %10 : vector<2x4x256xf32>
    %16 = arith.mulf %3, %3 : vector<2x4x256xf32>
    %17 = arith.mulf %12, %16 : vector<2x4x256xf32>
    %18 = arith.mulf %15, %15 : vector<2x4x256xf32>
    %19 = arith.mulf %17, %18 : vector<2x4x256xf32>
    %cst_8 = arith.constant 1.000000e+00 : f32
    %20 = vector.broadcast %cst_8 : f32 to vector<2x4x256xf32>
    %21 = arith.cmpf olt, %4, %20 : vector<2x4x256xf32>
    %cst_9 = arith.constant 0.000000e+00 : f32
    %22 = vector.broadcast %cst_9 : f32 to vector<2x4x256xf32>
    %23 = arith.select %21, %19, %22 : vector<2x4x256xi1>, vector<2x4x256xf32>
    %24 = arith.select %6, %14, %23 : vector<2x4x256xi1>, vector<2x4x256xf32>
    %c0_10 = arith.constant 0 : index
    %c0_11 = arith.constant 0 : index
    %25 = vector.load %arg4[%c0_10, %c0_11] : memref<2x256xf32, #tpu.memory_space<vmem>>, vector<2x256xf32>
    %26 = vector.shape_cast %25 : vector<2x256xf32> to vector<2x1x256xf32>
    %27 = vector.shape_cast %26 : vector<2x1x256xf32> to vector<2x1x256xf32>
    %28 = vector.broadcast %27 : vector<2x1x256xf32> to vector<2x4x256xf32>
    %29 = arith.mulf %24, %28 : vector<2x4x256xf32>
    %cst_12 = arith.constant 0.000000e+00 : f32
    %30 = vector.broadcast %cst_12 : f32 to vector<2x4x256xf32>
    %31 = arith.select %6, %28, %30 : vector<2x4x256xi1>, vector<2x4x256xf32>
    %c0_13 = arith.constant 0 : index
    %c0_14 = arith.constant 0 : index
    %c0_15 = arith.constant 0 : index
    %32 = vector.load %arg6[%c0_13, %c0_14, %c0_15] : memref<2x4x256xf32, #tpu.memory_space<vmem>>, vector<2x4x256xf32>
    %33 = arith.addf %32, %29 : vector<2x4x256xf32>
    %c0_16 = arith.constant 0 : index
    %c0_17 = arith.constant 0 : index
    %c0_18 = arith.constant 0 : index
    %34 = vector.load %arg6[%c0_16, %c0_17, %c0_18] : memref<2x4x256xf32, #tpu.memory_space<vmem>>, vector<2x4x256xf32>
    tpu.vector_store %arg6[%c0_16, %c0_17, %c0_18], %33 {strides = array<i32>} : memref<2x4x256xf32, #tpu.memory_space<vmem>>, vector<2x4x256xf32>,
    %c0_19 = arith.constant 0 : index
    %c0_20 = arith.constant 0 : index
    %c0_21 = arith.constant 0 : index
    %35 = vector.load %arg7[%c0_19, %c0_20, %c0_21] : memref<2x4x256xf32, #tpu.memory_space<vmem>>, vector<2x4x256xf32>
    %36 = arith.addf %35, %31 : vector<2x4x256xf32>
    %c0_22 = arith.constant 0 : index
    %c0_23 = arith.constant 0 : index
    %c0_24 = arith.constant 0 : index
    %37 = vector.load %arg7[%c0_22, %c0_23, %c0_24] : memref<2x4x256xf32, #tpu.memory_space<vmem>>, vector<2x4x256xf32>
    tpu.vector_store %arg7[%c0_22, %c0_23, %c0_24], %36 {strides = array<i32>} : memref<2x4x256xf32, #tpu.memory_space<vmem>>, vector<2x4x256xf32>,
    %c0_i32_25 = arith.constant 0 : i32
    %38 = arith.cmpi eq, %arg1, %c0_i32_25 : i32
    %39 = arith.extui %38 : i1 to i32
    %c0_i32_26 = arith.constant 0 : i32
    %40 = arith.cmpi ne, %39, %c0_i32_26 : i32
    scf.if %40 {
      %c0_27 = arith.constant 0 : index
      %c0_28 = arith.constant 0 : index
      %c0_29 = arith.constant 0 : index
      %41 = vector.load %arg6[%c0_27, %c0_28, %c0_29] : memref<2x4x256xf32, #tpu.memory_space<vmem>>, vector<2x4x256xf32>
      %42 = vector.shape_cast %41 : vector<2x4x256xf32> to vector<1x2x4x256xf32>
      %cst_30 = arith.constant dense<0.000000e+00> : vector<1xf32>
      %43 = vector.multi_reduction <add>, %42, %cst_30 [1, 2, 3] : vector<1x2x4x256xf32> to vector<1xf32>
      %44 = vector.shape_cast %43 : vector<1xf32> to vector<1x1x1x1xf32>
      %45 = vector.extract %44[0, 0, 0, 0] : f32 from vector<1x1x1x1xf32>
      %c0_31 = arith.constant 0 : index
      %c0_32 = arith.constant 0 : index
      %c0_33 = arith.constant 0 : index
      %46 = vector.load %arg7[%c0_31, %c0_32, %c0_33] : memref<2x4x256xf32, #tpu.memory_space<vmem>>, vector<2x4x256xf32>
      %47 = vector.shape_cast %46 : vector<2x4x256xf32> to vector<1x2x4x256xf32>
      %cst_34 = arith.constant dense<0.000000e+00> : vector<1xf32>
      %48 = vector.multi_reduction <add>, %47, %cst_34 [1, 2, 3] : vector<1x2x4x256xf32> to vector<1xf32>
      %49 = vector.shape_cast %48 : vector<1xf32> to vector<1x1x1x1xf32>
      %50 = vector.extract %49[0, 0, 0, 0] : f32 from vector<1x1x1x1xf32>
      %51 = tpu.iota {dimensions = array<i32: 2>} : vector<1x8x128xi32>
      %c0_i32_35 = arith.constant 0 : i32
      %52 = vector.broadcast %c0_i32_35 : i32 to vector<1x8x128xi32>
      %53 = arith.cmpi eq, %51, %52 : vector<1x8x128xi32>
      %c1_i32 = arith.constant 1 : i32
      %54 = vector.broadcast %c1_i32 : i32 to vector<1x8x128xi32>
      %55 = arith.cmpi eq, %51, %54 : vector<1x8x128xi32>
      %cst_36 = arith.constant 0.000000e+00 : f32
      %56 = vector.broadcast %50 : f32 to vector<1x8x128xf32>
      %57 = vector.broadcast %cst_36 : f32 to vector<1x8x128xf32>
      %58 = arith.select %55, %56, %57 : vector<1x8x128xi1>, vector<1x8x128xf32>
      %59 = vector.broadcast %45 : f32 to vector<1x8x128xf32>
      %60 = arith.select %53, %59, %58 : vector<1x8x128xi1>, vector<1x8x128xf32>
      %c0_37 = arith.constant 0 : index
      %c0_38 = arith.constant 0 : index
      %c0_39 = arith.constant 0 : index
      %61 = vector.load %arg5[%c0_37, %c0_38, %c0_39] : memref<1x8x128xf32, #tpu.memory_space<vmem>>, vector<1x8x128xf32>
      tpu.vector_store %arg5[%c0_37, %c0_38, %c0_39], %60 {strides = array<i32>} : memref<1x8x128xf32, #tpu.memory_space<vmem>>, vector<1x8x128xf32>,
    } else {
    }
    return
  }
  func.func @transform_0(%arg0: i32, %arg1: i32) -> (i32, i32, i32) {
    %c1_i32 = arith.constant 1 : i32
    %0 = arith.muli %arg0, %c1_i32 : i32
    %1 = arith.addi %0, %arg1 : i32
    %c0_i32 = arith.constant 0 : i32
    %c0_i32_0 = arith.constant 0 : i32
    %c0_i32_1 = arith.constant 0 : i32
    return %c0_i32, %c0_i32_0, %1 : i32, i32, i32
  }
  func.func @transform_1(%arg0: i32, %arg1: i32) -> (i32, i32, i32) {
    %c1_i32 = arith.constant 1 : i32
    %0 = arith.muli %arg0, %c1_i32 : i32
    %1 = arith.addi %0, %arg1 : i32
    %c0_i32 = arith.constant 0 : i32
    %c0_i32_0 = arith.constant 0 : i32
    %c0_i32_1 = arith.constant 0 : i32
    return %c0_i32, %c0_i32_0, %1 : i32, i32, i32
  }
  func.func @transform_2(%arg0: i32, %arg1: i32) -> (i32, i32) {
    %c1_i32 = arith.constant 1 : i32
    %0 = arith.muli %arg0, %c1_i32 : i32
    %1 = arith.addi %0, %arg1 : i32
    %c0_i32 = arith.constant 0 : i32
    %c0_i32_0 = arith.constant 0 : i32
    return %c0_i32, %1 : i32, i32
  }
  func.func @transform_3(%arg0: i32, %arg1: i32) -> (i32, i32, i32) {
    %c0_i32 = arith.constant 0 : i32
    %c0_i32_0 = arith.constant 0 : i32
    %c0_i32_1 = arith.constant 0 : i32
    return %arg0, %c0_i32, %c0_i32_0 : i32, i32, i32
  }
}

</mosaic_0001>

<bundles_post_ra>
// kernel: _focal_loss_impl.1
= control target key start
LH: loop header
LB: loop body
LE: loop exit
PB: predicated region body
PF: predicated region fallthrough
CT: control target
= control target key end

     0   :  { %v134_v6 = vlaneseq  ;;  %vm181_vm4 = vcmask 1043456   ;;  %s316_s0 = inlined_call_operand.vmem [shape: f32[2,4,256], index: 0, kind: input, shape index: {}]   ;;  %s317_s1 = inlined_call_operand.vmem [shape: f32[2,4,256], index: 1, kind: input, shape index: {}]   ;;  %s318_s2 = inlined_call_operand.vmem [shape: f32[2,256], index: 2, kind: input, shape index: {}]   ;;  %s319_s3 = inlined_call_operand.vmem [shape: f32[1,8,128], index: 3, kind: output, shape index: {}]  }
   0x1   :  { %v88_v0 = vld [vmem:[%s316_s0] sm:$0xff]  ;;  %v89_v1 = vld [vmem:[%s316_s0 + $0x8] sm:$0xff] }
   0x2   :  { %v90_v2 = vld [vmem:[%s317_s1] sm:$0xff]  ;;  %v91_v3 = vld [vmem:[%s317_s1 + $0x8] sm:$0xff]  ;;  %v94_v4 = vsub.f32 1.0, %v88_v0  ;;  %v95_v5 = vsub.f32 1.0, %v89_v1  ;;  %v135_v9 = vshrl.u32 %v134_v6, 7  ;;  %v110_v20 = vmul.f32 %v88_v0, %v88_v0 }
   0x3   :  { %vm92_vm0 = vcmp.eq.f32.partialorder %v90_v2, 1.0  ;;  %vm93_vm1 = vcmp.eq.f32.partialorder %v91_v3, 1.0  ;;  %v96_v10 = vsub.f32 1.0, %v90_v2  ;;  %v97_v11 = vsub.f32 1.0, %v91_v3 }
   0x4   :  { %v98_v7 = vsel %vm92_vm0, %v88_v0, %v94_v4  ;;  %v99_v8 = vsel %vm93_vm1, %v89_v1, %v95_v5  ;;  %v253_v12 = vld.sshfl [vmem:[%s318_s2] sm:$0x33 pattern:$0x75316420]  ;;  %v136_v13 = vsub.s32 0, %v135_v9  ;;  %v140_v14 = vsub.s32 1, %v135_v9 }
   0x5   :  { %258 = vlog2.f32 %v98_v7  ;;  %v108_v17 = vmul.f32 %v96_v10, %v96_v10  ;;  %v109_v18 = vmul.f32 %v97_v11, %v97_v11  ;;  %v133_v19 = vcombine.high %v253_v12, %v253_v12 }
   0x6   :  { %260 = vlog2.f32 %v99_v8  ;;  %v137_v15 = vrot.slane %v253_v12, %v136_v13  ;;  %v141_v16 = vrot.slane %v253_v12, %v140_v14  ;;  %v104_v22 = vmul.f32 %v94_v4, %v94_v4 }
   0x7   :  { %v111_v23 = vmul.f32 %v89_v1, %v89_v1  ;;  %v105_v27 = vmul.f32 %v95_v5, %v95_v5  ;;  %v114_v28 = vmul.f32 %v108_v17, %v108_v17  ;;  %v115_v29 = vmul.f32 %v109_v18, %v109_v18 }
   0x8   :  { %v150_v24 = vcombine.low %v137_v15, %v141_v16  ;;  %v145_v31 = vrot.slane %v133_v19, %v136_v13  ;;  %v149_v32 = vrot.slane %v133_v19, %v140_v14  ;;  %vm118_vm2 = vcmp.lt.f32.partialorder %v90_v2, 1.0 }
   0x9   :  { %vm119_vm3 = vcmp.lt.f32.partialorder %v91_v3, 1.0  ;;  %v223_v17 = vand.u32 127, %v134_v6 }
   0xa   :  { %v156_v33 = vsel %vm92_vm0, %v150_v24, 0.0  ;;  %v151_v41 = vcombine.low %v145_v31, %v149_v32 }
   0xb   :  { %v202_v39 = vcombine.high %v156_v33, %v156_v33  ;;  %v206_v47 = vsel %vm181_vm4, %v156_v33, 0.0  ;;  %vm225_vm5 = vcmp.eq.s32.totalorder %v223_v17, 1  ;;  %vm224_vm6 = vcmp.eq.s32.totalorder %v223_v17, 0 }
   0xc   :  { %v157_v50 = vsel %vm93_vm1, %v151_v41, 0.0 }
   0xd   :  { %v207_v48 = vsel %vm181_vm4, %v202_v39, 0.0  ;;  %v203_v57 = vcombine.high %v157_v50, %v157_v50  ;;  %v209_v58 = vsel %vm181_vm4, %v157_v50, 0.0 }
   0xe   :  { %v208_v54 = vadd.f32 %v207_v48, %v206_v47 }
   0xf   :  { %v259_v21 = vpop.eup %258  ;;  %v211_v63 = vsel %vm181_vm4, %v203_v57, 0.0 }
  0x10   :  { %v261_v25 = vpop.eup %260  ;;  %v101_v26 = vmul.f32 0.6931472, %v259_v21  ;;  %v210_v62 = vadd.f32 %v209_v58, %v208_v54 }
  0x11   :  { %v103_v30 = vmul.f32 0.6931472, %v261_v25 }
  0x12   :  { %v112_v34 = vmul.f32 %v110_v20, %v101_v26  ;;  %v106_v35 = vmul.f32 %v104_v22, %v101_v26  ;;  %v212_v1 = vadd.f32 %v211_v63, %v210_v62 }
  0x13   :  { %v113_v36 = vmul.f32 %v111_v23, %v103_v30  ;;  %v107_v37 = vmul.f32 %v105_v27, %v103_v30 }
  0x14   :  { %v116_v38 = vmul.f32 %v114_v28, %v112_v34 }
  0x15   :  { %v117_v40 = vmul.f32 %v115_v29, %v113_v36 }
  0x16   :  { %v120_v42 = vsel %vm118_vm2, %v116_v38, 0.0 }
  0x17   :  { %v121_v43 = vsel %vm119_vm3, %v117_v40, 0.0  ;;  %v122_v44 = vsel %vm92_vm0, %v106_v35, %v120_v42 }
  0x18   :  { %v123_v45 = vsel %vm93_vm1, %v107_v37, %v121_v43  ;;  %v154_v46 = vmul.f32 %v150_v24, %v122_v44 }
  0x19   :  { %v155_v49 = vmul.f32 %v151_v41, %v123_v45 }
  0x1a   :  { %v177_v51 = vcombine.high %v154_v46, %v154_v46  ;;  %v182_v52 = vsel %vm181_vm4, %v154_v46, 0.0 }
  0x1b   :  { %v178_v53 = vcombine.high %v155_v49, %v155_v49  ;;  %v185_v56 = vsel %vm181_vm4, %v155_v49, 0.0 }
  0x1c   :  { %v183_v55 = vsel %vm181_vm4, %v177_v51, 0.0 }
  0x1d   :  { %v184_v59 = vadd.f32 %v183_v55, %v182_v52  ;;  %v187_v60 = vsel %vm181_vm4, %v178_v53, 0.0 }
  0x1f   :  { %v186_v61 = vadd.f32 %v185_v56, %v184_v59 }
  0x21   :  { %v188_v0 = vadd.f32 %v187_v60, %v186_v61 }
  0x23   :  { %189 = vadd.xlane.f32.xlu0 %v188_v0 }
  0x27   :  { %213 = vadd.xlane.f32.xlu0 %v212_v1 }
  0xb0   :  { %v190_v2 = vpop.xlane.xlu0 %189 }
  0xb1   :  { %v191_v3 = vrot.slane %v190_v2, 4 }
  0xb3   :  { %v192_v4 = vadd.f32 %v191_v3, %v190_v2 }
  0xb4   :  { %v214_v5 = vpop.xlane.xlu0 %213 }
  0xb5   :  { %v193_v7 = vrot.slane %v192_v4, 2  ;;  %v215_v8 = vrot.slane %v214_v5, 4 }
  0xb7   :  { %v216_v9 = vadd.f32 %v215_v8, %v214_v5  ;;  %v194_v10 = vadd.f32 %v193_v7, %v192_v4 }
  0xb9   :  { %v217_v11 = vrot.slane %v216_v9, 2  ;;  %v195_v12 = vrot.slane %v194_v10, 1 }
  0xbb   :  { %v218_v13 = vadd.f32 %v217_v11, %v216_v9  ;;  %v196_v14 = vadd.f32 %v195_v12, %v194_v10 }
  0xbd   :  { %254 = vpush %v196_v14  ;;  %v219_v15 = vrot.slane %v218_v13, 1 }
  0xbf   :  { %v220_v16 = vadd.f32 %v219_v15, %v218_v13 }
  0xc1   :  { %256 = vpush %v220_v16 }
  0xee   :  { %s255_s1 = spop %254 }
  0xef   :  { %v228_v19 = vstv %s255_s1 }
  0xf2   :  { %s257_s2 = spop %256 }
  0xf3   :  { %v226_v18 = vstv %s257_s2 }
  0xf4   :  { %v227_v20 = vsel %vm225_vm5, %v226_v18, 0.0 }
  0xf5   :  { %v229_v21 = vsel %vm224_vm6, %v228_v19, %v227_v20 }
  0xf6   :  { %230 = vst [vmem:[%s319_s3] sm:$0xff] %v229_v21 }

</bundles_post_ra>
